<compile_context>
chip_gen: v6e
topology: v6e:2x2x1
jax: 0.10.0
libtpu: 0.0.40
codegen_flags: <defaults>
</compile_context>

<pallas_src>
import functools

import jax
import jax.numpy as jnp
from jax.experimental import pallas as pl
from jax.experimental.pallas import tpu as pltpu

LATENT_SIZE = 100
L_PAD = 128                 # each head padded to one full 128-lane slot
HEADS_OUT = 2 * L_PAD       # [ mean(128) | log_var(128) ]
_PREFERRED_TILE = 512       # multiple of 128 (v5e MXU) and 256 (v6e/v7x MXU)


def _round_up(x, m):
    return ((x + m - 1) // m) * m


def _cvae_encoder_kernel(xi_ref, xc_ref, w1i_ref, w1c_ref, b1_ref,
                         wh_ref, bh_ref, out_ref):
    # hidden = relu(inp @ W1_in + cond @ W1_cond + b1), f32 accumulation.
    h = jnp.dot(xi_ref[...], w1i_ref[...], preferred_element_type=jnp.float32)
    h = h + jnp.dot(xc_ref[...], w1c_ref[...], preferred_element_type=jnp.float32)
    h = jnp.maximum(h + b1_ref[...], 0.0)                    # [Bt, H] f32
    # Fused heads: one MXU pass, lane-dense 256-wide output store.
    h = h.astype(wh_ref.dtype)
    out = jnp.dot(h, wh_ref[...], preferred_element_type=jnp.float32) + bh_ref[...]
    out_ref[...] = out.astype(out_ref.dtype)                 # [Bt, 256]


def pack_cvae_params(w1, b1, wm, bm, wv, bv, input_size, condition_size,
                     stream_dtype=jnp.bfloat16):
    """One-time parameter packing (call once, NOT per inference).

    PyTorch Linear weights are [out, in]; we store them [in, out], split W1 by
    the concat boundary, and fuse the two heads into one lane-padded weight.
    Matmul weights are stored in `stream_dtype` (bf16 by default: the kernel is
    HBM-bandwidth bound and the MXU takes bf16 at full rate with f32 accum);
    biases stay f32 so the epilogue adds are exact.
    """
    H = w1.shape[0]
    L = wm.shape[0]
    assert L <= L_PAD

    w1_t = jnp.asarray(w1, jnp.float32).T                    # [D, H]
    w1_in = w1_t[:input_size].astype(stream_dtype)            # [D_in, H]
    w1_cond = w1_t[input_size:input_size + condition_size].astype(stream_dtype)
    b1_2d = jnp.asarray(b1, jnp.float32).reshape(1, H)

    # Packed heads: zero-padded so padding never leaks into the sliced result.
    wh = jnp.zeros((H, HEADS_OUT), jnp.float32)
    wh = wh.at[:, :L].set(jnp.asarray(wm, jnp.float32).T)
    wh = wh.at[:, L_PAD:L_PAD + L].set(jnp.asarray(wv, jnp.float32).T)
    wh = wh.astype(stream_dtype)
    bh = jnp.zeros((1, HEADS_OUT), jnp.float32)
    bh = bh.at[0, :L].set(jnp.asarray(bm, jnp.float32))
    bh = bh.at[0, L_PAD:L_PAD + L].set(jnp.asarray(bv, jnp.float32))
    return (w1_in, w1_cond, b1_2d, wh, bh)


@functools.partial(jax.jit, static_argnames=("preferred_tile", "return_packed"))
def cvae_encoder(inp, cond, params, preferred_tile=_PREFERRED_TILE,
                 return_packed=False):
    """inp: [B, D_in], cond: [B, D_cond]; params from pack_cvae_params()."""
    w1_in, w1_cond, b1, wh, bh = params
    B, D_in = inp.shape
    D_cond = cond.shape[1]
    H = w1_in.shape[1]
    L = LATENT_SIZE

    stream_dtype = w1_in.dtype
    sublane = 16 if stream_dtype == jnp.bfloat16 else 8

    # Ideally upstream already produces stream_dtype activations; this cast is
    # a no-op in that case.
    inp = inp.astype(stream_dtype)
    cond = cond.astype(stream_dtype)

    # Tile: big (fewer grid steps, full MXU M-dim) but clamped for tiny B so a
    # B=2 call doesn't pay for 512 dead rows.
    tile = _round_up(min(preferred_tile, _round_up(B, sublane)), sublane)

    # Pad only to the sublane multiple (cheap / usually a no-op); the ragged
    # last grid block (if B_sub % tile != 0) is handled by Pallas itself
    # (padded reads, masked writes) -- no full extra pad pass over the inputs.
    B_sub = _round_up(B, sublane)
    if B_sub != B:
        inp = jnp.pad(inp, ((0, B_sub - B), (0, 0)))
        cond = jnp.pad(cond, ((0, B_sub - B), (0, 0)))
    n_tiles = pl.cdiv(B_sub, tile)

    in_bytes = stream_dtype.dtype.itemsize if hasattr(stream_dtype, "dtype") \
        else jnp.dtype(stream_dtype).itemsize
    flops = 2 * n_tiles * tile * (D_in * H + D_cond * H + H * HEADS_OUT)
    bytes_accessed = (B_sub * (D_in + D_cond) * in_bytes
                      + B_sub * HEADS_OUT * 4
                      + (w1_in.size + w1_cond.size + wh.size) * in_bytes
                      + (b1.size + bh.size) * 4)

    out = pl.pallas_call(
        _cvae_encoder_kernel,
        out_shape=jax.ShapeDtypeStruct((B_sub, HEADS_OUT), jnp.float32),
        grid=(n_tiles,),
        in_specs=[
            pl.BlockSpec((tile, D_in), lambda i: (i, 0)),        # inp tile
            pl.BlockSpec((tile, D_cond), lambda i: (i, 0)),      # cond tile
            pl.BlockSpec((D_in, H), lambda i: (0, 0)),           # W1_in   (resident)
            pl.BlockSpec((D_cond, H), lambda i: (0, 0)),         # W1_cond (resident)
            pl.BlockSpec((1, H), lambda i: (0, 0)),              # b1      (resident)
            pl.BlockSpec((H, HEADS_OUT), lambda i: (0, 0)),      # fused heads W
            pl.BlockSpec((1, HEADS_OUT), lambda i: (0, 0)),      # fused heads b
        ],
        out_specs=pl.BlockSpec((tile, HEADS_OUT), lambda i: (i, 0)),
        compiler_params=pltpu.CompilerParams(
            dimension_semantics=("parallel",)),
        cost_estimate=pl.CostEstimate(
            flops=flops, transcendentals=0, bytes_accessed=int(bytes_accessed)),
    )(inp, cond, w1_in, w1_cond, b1, wh, bh)

    if return_packed:
        # Downstream (e.g. a fused reparameterization kernel) can consume the
        # packed [B, 256] layout directly and skip the two slice copies below.
        return out[:B]
    mean = out[:B, :L]
    log_var = out[:B, L_PAD:L_PAD + L]
    return mean, log_var


def _reference(inp, cond, w1, b1, wm, bm, wv, bv):
    x = jnp.concatenate([inp, cond], axis=1)
    h = jax.nn.relu(x @ w1.T + b1)
    return h @ wm.T + bm, h @ wv.T + bv


if __name__ == "__main__":
    # Small shapes consistent with the module's forward.
    B = 2
    INPUT_SIZE = 16
    CONDITION_SIZE = 8
    HIDDEN_SIZE = 32

    key = jax.random.PRNGKey(0)
    keys = jax.random.split(key, 10)

    inp = jax.random.normal(keys[0], (B, INPUT_SIZE), dtype=jnp.float32)
    cond = jax.random.normal(keys[1], (B, CONDITION_SIZE), dtype=jnp.float32)

    D = INPUT_SIZE + CONDITION_SIZE
    # Deterministic parameter init (PyTorch Linear layout: [out_features, in_features]).
    w1 = jax.random.normal(keys[2], (HIDDEN_SIZE, D), dtype=jnp.float32) * 0.1
    b1 = jax.random.normal(keys[3], (HIDDEN_SIZE,), dtype=jnp.float32) * 0.1
    wm = jax.random.normal(keys[4], (LATENT_SIZE, HIDDEN_SIZE), dtype=jnp.float32) * 0.1
    bm = jax.random.normal(keys[5], (LATENT_SIZE,), dtype=jnp.float32) * 0.1
    wv = jax.random.normal(keys[6], (LATENT_SIZE, HIDDEN_SIZE), dtype=jnp.float32) * 0.1
    bv = jax.random.normal(keys[7], (LATENT_SIZE,), dtype=jnp.float32) * 0.1

    # --- f32 streaming path (exact): tiny batch, tile clamped to 8 rows. ---
    params_f32 = pack_cvae_params(w1, b1, wm, bm, wv, bv,
                                  INPUT_SIZE, CONDITION_SIZE,
                                  stream_dtype=jnp.float32)
    params_f32 = jax.block_until_ready(params_f32)

    mean, log_var = cvae_encoder(inp, cond, params_f32)
    jax.block_until_ready((mean, log_var))

    ref_mean, ref_log_var = _reference(inp, cond, w1, b1, wm, bm, wv, bv)
    assert mean.shape == (B, LATENT_SIZE) and log_var.shape == (B, LATENT_SIZE)
    assert jnp.allclose(mean, ref_mean, atol=1e-4, rtol=1e-4)
    assert jnp.allclose(log_var, ref_log_var, atol=1e-4, rtol=1e-4)

    # --- f32, larger batch: exercises the big tile + ragged last block. ---
    B2 = 600
    inp2 = jax.random.normal(keys[8], (B2, INPUT_SIZE), dtype=jnp.float32)
    cond2 = jax.random.normal(keys[9], (B2, CONDITION_SIZE), dtype=jnp.float32)
    mean2, log_var2 = cvae_encoder(inp2, cond2, params_f32)
    jax.block_until_ready((mean2, log_var2))
    ref_mean2, ref_log_var2 = _reference(inp2, cond2, w1, b1, wm, bm, wv, bv)
    assert jnp.allclose(mean2, ref_mean2, atol=1e-4, rtol=1e-4)
    assert jnp.allclose(log_var2, ref_log_var2, atol=1e-4, rtol=1e-4)

    # --- bf16 streaming path (default packing): halves HBM reads, f32 accum. ---
    params_bf16 = pack_cvae_params(w1, b1, wm, bm, wv, bv,
                                   INPUT_SIZE, CONDITION_SIZE)
    params_bf16 = jax.block_until_ready(params_bf16)
    mean3, log_var3 = cvae_encoder(inp2, cond2, params_bf16)
    jax.block_until_ready((mean3, log_var3))
    assert jnp.allclose(mean3, ref_mean2, atol=5e-2, rtol=5e-2)
    assert jnp.allclose(log_var3, ref_log_var2, atol=5e-2, rtol=5e-2)

    print("KERNEL_OK")
</pallas_src>

<mosaic_0001>
module attributes {stable_mosaic.version = 11 : i64} {
  func.func @_cvae_encoder_kernel(%arg0: i32, %arg1: memref<8x16xf32, #tpu.memory_space<vmem>>, %arg2: memref<8x8xf32, #tpu.memory_space<vmem>>, %arg3: memref<16x32xf32, #tpu.memory_space<vmem>>, %arg4: memref<8x32xf32, #tpu.memory_space<vmem>>, %arg5: memref<1x32xf32, #tpu.memory_space<vmem>>, %arg6: memref<32x256xf32, #tpu.memory_space<vmem>>, %arg7: memref<1x256xf32, #tpu.memory_space<vmem>>, %arg8: memref<8x256xf32, #tpu.memory_space<vmem>>) attributes {dimension_semantics = [#tpu.dimension_semantics<parallel>], iteration_bounds = array<i64: 1>, scalar_prefetch = 0 : i64, scratch_operands = 0 : i64, tpu.core_type = #tpu.core_type<tc>, window_params = [{transform_indices = @transform_0, window_bounds = array<i64: 8, 16>}, {transform_indices = @transform_1, window_bounds = array<i64: 8, 8>}, {pipeline_mode = #tpu.pipeline_mode<synchronous>, transform_indices = @transform_2, window_bounds = array<i64: 16, 32>}, {pipeline_mode = #tpu.pipeline_mode<synchronous>, transform_indices = @transform_3, window_bounds = array<i64: 8, 32>}, {pipeline_mode = #tpu.pipeline_mode<synchronous>, transform_indices = @transform_4, window_bounds = array<i64: 1, 32>}, {pipeline_mode = #tpu.pipeline_mode<synchronous>, transform_indices = @transform_5, window_bounds = array<i64: 32, 256>}, {pipeline_mode = #tpu.pipeline_mode<synchronous>, transform_indices = @transform_6, window_bounds = array<i64: 1, 256>}, {transform_indices = @transform_7, window_bounds = array<i64: 8, 256>}]} {
    %c0 = arith.constant 0 : index
    %c0_0 = arith.constant 0 : index
    %0 = vector.load %arg1[%c0, %c0_0] : memref<8x16xf32, #tpu.memory_space<vmem>>, vector<8x16xf32>
    %c0_1 = arith.constant 0 : index
    %c0_2 = arith.constant 0 : index
    %1 = vector.load %arg3[%c0_1, %c0_2] : memref<16x32xf32, #tpu.memory_space<vmem>>, vector<16x32xf32>
    %cst = arith.constant dense<0.000000e+00> : vector<8x32xf32>
    %2 = tpu.matmul %0, %1, %cst {dimension_numbers = #tpu.dot_dimension_numbers<[1], [0], [0], [1], [0, 0, 1, 1], [], []>} : vector<8x16xf32>, vector<16x32xf32>, vector<8x32xf32> -> vector<8x32xf32>
    %c0_3 = arith.constant 0 : index
    %c0_4 = arith.constant 0 : index
    %3 = vector.load %arg2[%c0_3, %c0_4] : memref<8x8xf32, #tpu.memory_space<vmem>>, vector<8x8xf32>
    %c0_5 = arith.constant 0 : index
    %c0_6 = arith.constant 0 : index
    %4 = vector.load %arg4[%c0_5, %c0_6] : memref<8x32xf32, #tpu.memory_space<vmem>>, vector<8x32xf32>
    %cst_7 = arith.constant dense<0.000000e+00> : vector<8x32xf32>
    %5 = tpu.matmul %3, %4, %cst_7 {dimension_numbers = #tpu.dot_dimension_numbers<[1], [0], [0], [1], [0, 0, 1, 1], [], []>} : vector<8x8xf32>, vector<8x32xf32>, vector<8x32xf32> -> vector<8x32xf32>
    %6 = arith.addf %2, %5 : vector<8x32xf32>
    %c0_8 = arith.constant 0 : index
    %c0_9 = arith.constant 0 : index
    %7 = vector.load %arg5[%c0_8, %c0_9] : memref<1x32xf32, #tpu.memory_space<vmem>>, vector<1x32xf32>
    %8 = vector.broadcast %7 : vector<1x32xf32> to vector<8x32xf32>
    %9 = arith.addf %6, %8 : vector<8x32xf32>
    %cst_10 = arith.constant 0.000000e+00 : f32
    %10 = vector.broadcast %cst_10 : f32 to vector<8x32xf32>
    %11 = arith.maximumf %9, %10 : vector<8x32xf32>
    %c0_11 = arith.constant 0 : index
    %c0_12 = arith.constant 0 : index
    %12 = vector.load %arg6[%c0_11, %c0_12] : memref<32x256xf32, #tpu.memory_space<vmem>>, vector<32x256xf32>
    %cst_13 = arith.constant dense<0.000000e+00> : vector<8x256xf32>
    %13 = tpu.matmul %11, %12, %cst_13 {dimension_numbers = #tpu.dot_dimension_numbers<[1], [0], [0], [1], [0, 0, 1, 1], [], []>} : vector<8x32xf32>, vector<32x256xf32>, vector<8x256xf32> -> vector<8x256xf32>
    %c0_14 = arith.constant 0 : index
    %c0_15 = arith.constant 0 : index
    %14 = vector.load %arg7[%c0_14, %c0_15] : memref<1x256xf32, #tpu.memory_space<vmem>>, vector<1x256xf32>
    %15 = vector.broadcast %14 : vector<1x256xf32> to vector<8x256xf32>
    %16 = arith.addf %13, %15 : vector<8x256xf32>
    %c0_16 = arith.constant 0 : index
    %c0_17 = arith.constant 0 : index
    %17 = vector.load %arg8[%c0_16, %c0_17] : memref<8x256xf32, #tpu.memory_space<vmem>>, vector<8x256xf32>
    tpu.vector_store %arg8[%c0_16, %c0_17], %16 {strides = array<i32>} : memref<8x256xf32, #tpu.memory_space<vmem>>, vector<8x256xf32>,
    return
  }
  func.func @transform_0(%arg0: i32) -> (i32, i32) {
    %c0_i32 = arith.constant 0 : i32
    %c0_i32_0 = arith.constant 0 : i32
    return %arg0, %c0_i32 : i32, i32
  }
  func.func @transform_1(%arg0: i32) -> (i32, i32) {
    %c0_i32 = arith.constant 0 : i32
    %c0_i32_0 = arith.constant 0 : i32
    return %arg0, %c0_i32 : i32, i32
  }
  func.func @transform_2(%arg0: i32) -> (i32, i32) {
    %c0_i32 = arith.constant 0 : i32
    %c0_i32_0 = arith.constant 0 : i32
    %c0_i32_1 = arith.constant 0 : i32
    return %c0_i32, %c0_i32_0 : i32, i32
  }
  func.func @transform_3(%arg0: i32) -> (i32, i32) {
    %c0_i32 = arith.constant 0 : i32
    %c0_i32_0 = arith.constant 0 : i32
    %c0_i32_1 = arith.constant 0 : i32
    return %c0_i32, %c0_i32_0 : i32, i32
  }
  func.func @transform_4(%arg0: i32) -> (i32, i32) {
    %c0_i32 = arith.constant 0 : i32
    %c0_i32_0 = arith.constant 0 : i32
    %c0_i32_1 = arith.constant 0 : i32
    return %c0_i32, %c0_i32_0 : i32, i32
  }
  func.func @transform_5(%arg0: i32) -> (i32, i32) {
    %c0_i32 = arith.constant 0 : i32
    %c0_i32_0 = arith.constant 0 : i32
    %c0_i32_1 = arith.constant 0 : i32
    return %c0_i32, %c0_i32_0 : i32, i32
  }
  func.func @transform_6(%arg0: i32) -> (i32, i32) {
    %c0_i32 = arith.constant 0 : i32
    %c0_i32_0 = arith.constant 0 : i32
    %c0_i32_1 = arith.constant 0 : i32
    return %c0_i32, %c0_i32_0 : i32, i32
  }
  func.func @transform_7(%arg0: i32) -> (i32, i32) {
    %c0_i32 = arith.constant 0 : i32
    %c0_i32_0 = arith.constant 0 : i32
    return %arg0, %c0_i32 : i32, i32
  }
}

</mosaic_0001>

<bundles_post_ra>
// kernel: cvae_encoder.1
= control target key start
LH: loop header
LB: loop body
LE: loop exit
PB: predicated region body
PF: predicated region fallthrough
CT: control target
= control target key end

     0   :  { %12 = vsyncpa [#allocation3], 0  ;;  %s352_s24 = smov [#allocation2]   ;;  %s427_s0 = inlined_call_operand.vmem [shape: f32[8,16], index: 0, kind: input, shape index: {}]   ;;  %s428_s1 = inlined_call_operand.vmem [shape: f32[8,8], index: 1, kind: input, shape index: {}]   ;;  %s429_s2 = inlined_call_operand.vmem [shape: f32[16,32], index: 2, kind: input, shape index: {}]   ;;  %s430_s3 = inlined_call_operand.vmem [shape: f32[8,32], index: 3, kind: input, shape index: {}]   ;;  %s431_s4 = inlined_call_operand.vmem [shape: f32[1,32], index: 4, kind: input, shape index: {}]   ;;  %s432_s5 = inlined_call_operand.hbm [shape: f32[32,256], index: 5, kind: input, shape index: {}]   ;;  %s433_s6 = inlined_call_operand.vmem [shape: f32[1,256], index: 6, kind: input, shape index: {}]   ;;  %s434_s7 = inlined_call_operand.vmem [shape: f32[8,256], index: 7, kind: output, shape index: {}]  }
   0x1   :  { %s28_s25 = sshll.u32 %s352_s24, 4  ;;  %s29_s25 = int_to_ptr.vmem [resolvable:$true] %s28_s25 }
   0x2   :  { %s338_s26 = scalar_lea.vmem %s29_s25, 1024  ;;  %p343_p1 = scmp.lt.s32.totalorder %s29_s25, %s29_s25 }
   0x3   :  { %p339_p0 = scmp.ne.s32.totalorder %s29_s25, %s338_s26  ;;  %p344_p2 = scmp.lt.s32.totalorder %s338_s26, %s338_s26 }
   0x5   :  { %p345_p3 = por %p344_p2, %p343_p1 }
   0x7   :  { %p346_p4 = pnand %p345_p3, %p339_p0 }
   0x9   :  { %349 = shalt.err (!%p346_p4)
}
   0xa   :  { %s353_s27 = smov 256   ;;  %s354_s28 = smov 16  }
   0xb   :  { %34 = dma.hbm_to_vmem [thread:$0]  %s432_s5, 1024, %s29_s25, [#allocation3], %s353_s27, %s353_s27, %s354_s28  }
   0xc   :  { %350 = dma.done.wait [#allocation3], 1024  }
   0xd   :  { %351 = vsyncadd [#allocation3], 4294966272  ;;  %v355_v0 = vmov 0.0   ;;  %vm356_vm0 = vmmov 0   ;;  %vm45_vm1 = vcmask 64512   ;;  %v44_v1 = vld [vmem:[%s430_s3] sm:$0xff]  ;;  %v212_v22 = vlaneseq }
   0xe   :  { %313 = vmatprep.subr.mxu1 %v355_v0  ;;  %315 = vmatprep.mubr.msk.f32.mxu1 %vm356_vm0, %v355_v0  ;;  %v43_v2 = vld [vmem:[%s428_s1] sm:$0xff]  ;;  %v42_v3 = vld [vmem:[%s429_s2 + $0x8] sm:$0xff]  ;;  %vm119_vm2 = vcmask 130048   ;;  %v209_v6 = vld [vmem:[#allocation2 + $0x38] sm:$0xff]  ;;  %vm222_vm3 = vcmask 261120  }
   0xf   :  { %290 = vmatprep.mubr.f32.mxu0 %v355_v0  ;;  %314 = vmatpush3.msra.mxu1 %v44_v1  ;;  %v41_v4 = vld [vmem:[%s429_s2] sm:$0xff]  ;;  %v208_v7 = vld [vmem:[#allocation2 + $0x30] sm:$0xff]  ;;  %v207_v8 = vld [vmem:[#allocation2 + $0x28] sm:$0xff]  ;;  %v213_v23 = vshrl.u32 %v212_v22, 7 }
  0x10   :  { %316 = vmatmul.mubr.msk.f32.vlgmr.msra.gmra.mxu1 %vm45_vm1, %v43_v2  ;;  %318 = vmatprep.subr.mxu1 %v355_v0  ;;  %v40_v5 = vld [vmem:[%s427_s0] sm:$0xff]  ;;  %v205_v10 = vld [vmem:[#allocation2 + $0x18] sm:$0xff]  ;;  %v204_v11 = vld [vmem:[#allocation2 + $0x10] sm:$0xff] }
  0x11   :  { %319 = vmatpush3.msra.mxu1 %v42_v3  ;;  %322 = vmatprep.mubr.msk.f32.mxu1 %vm356_vm0, %v355_v0  ;;  %v206_v9 = vld [vmem:[#allocation2 + $0x20] sm:$0xff]  ;;  %v203_v12 = vld [vmem:[#allocation2 + $0x8] sm:$0xff]  ;;  %v214_v24 = vsub.s32 0, %v213_v23  ;;  %v218_v26 = vsub.s32 1, %v213_v23 }
  0x12   :  { %320 = vmatprep.subr.mxu1 %v355_v0  ;;  %250 = vmatprep.subr.mxu0 %v209_v6  ;;  %v202_v13 = vld [vmem:[#allocation2] sm:$0xff] }
  0x13   :  { %321 = vmatpush3.msra.mxu1 %v41_v4  ;;  %251 = vmatpush1.msra.mxu0 %v208_v7  ;;  %v306_v17 = vld [vmem:[%s431_s4] ss:$0 sm:$0xff] }
  0x14   :  { %323 = vmatmul.mubr.msk.f32.vlgmr.msra.gmra.mxu1 %vm119_vm2, %v40_v5  ;;  %252 = vmatprep.subr.mxu0 %v207_v8  ;;  %v210_v25 = vld [vmem:[%s433_s6] sm:$0x3] }
  0x15   :  { %253 = vmatpush1.msra.mxu0 %v206_v9  ;;  %v215_v27 = vrot.slane %v210_v25, %v214_v24  ;;  %v219_v28 = vrot.slane %v210_v25, %v218_v26 }
  0x16   :  { %254 = vmatprep.subr.mxu0 %v205_v10 }
  0x17   :  { %255 = vmatpush1.msra.mxu0 %v204_v11 }
  0x18   :  { %256 = vmatprep.subr.mxu0 %v203_v12 }
  0x19   :  { %257 = vmatpush1.msra.mxu0 %v202_v13 }
  0xd0   :  { %v115_v14 = vpop.f32.mrf.mxu1 }
  0xd2   :  { %v317_v15 = vpop.f32.mrf.mxu1 }
  0xd4   :  { %v189_v16 = vpop.f32.mrf.mxu1 }
  0xd5   :  { %v190_v18 = vadd.f32 %v189_v16, %v115_v14 }
  0xd6   :  { %v324_v19 = vpop.f32.mrf.mxu1 }
  0xd7   :  { %v200_v20 = vadd.f32 %v306_v17, %v190_v18 }
  0xd9   :  { %v201_v21 = vmax.f32 %v200_v20, 0.0 }
  0xdb   :  { %307 = vmatmul.mubr.msk.f32.vlgmr.msra.gmra.mxu0 %vm222_vm3, %v201_v21 }
 0x19b   :  { %v292_v29 = vpop.f32.mrf.mxu0 }
 0x19c   :  { %v293_v30 = vadd.f32 %v292_v29, %v215_v27 }
 0x19d   :  { %v294_v31 = vpop.f32.mrf.mxu0 }
 0x19e   :  { %297 = vst [vmem:[%s434_s7] sm:$0xff] %v293_v30  ;;  %v295_v32 = vadd.f32 %v294_v31, %v219_v28 }
 0x1a0   :  { %298 = vst [vmem:[%s434_s7 + $0x8] sm:$0xff] %v295_v32 }
 0x1a1   :  { %303 = vsyncpa [#allocation3], 1 }

</bundles_post_ra>
